<compile_context>
chip_gen: v7x
topology: tpu7x:2x2x1
jax: 0.10.0
libtpu: 0.0.40
codegen_flags: <defaults>
</compile_context>

<pallas_src>
import numpy as np
import jax
import jax.numpy as jnp
from jax.experimental import pallas as pl
from jax.experimental.pallas import tpu as pltpu


# Contract the last dim of both operands:  A[M, K], B[N, K]  ->  A @ B^T = [M, N].
_NT_DIMS = (((1,), (1,)), ((), ()))


def box_decoder_kernel(x_ref, w_mlp_t_ref, b_mlp_ref, w_heads_t_ref,
                       b_heads_t_ref, out_ref):
    # x tile arrives f32 [TB, F]; cast to bf16 after the DMA (no wrapper pass).
    x_bf = x_ref[...].astype(jnp.bfloat16)

    # layer 1 (transposed): feat^T = relu(W_mlp^T @ x^T + b) -> [H, TB] f32.
    # NT dot_general: no explicit XLU transpose; lane-dense MXU result.
    feat_t = jax.lax.dot_general(w_mlp_t_ref[...], x_bf, _NT_DIMS,
                                 preferred_element_type=jnp.float32)
    feat_t = jnp.maximum(feat_t + b_mlp_ref[...], 0.0)

    # fused heads: rows 0:3 center, 3:6 size, 6:10 quat -> [10, TB] f32.
    heads = jnp.dot(w_heads_t_ref[...], feat_t.astype(jnp.bfloat16),
                    preferred_element_type=jnp.float32)
    heads = heads + b_heads_t_ref[...]            # quat bias already folded in

    row = jax.lax.broadcasted_iota(jnp.int32, heads.shape, 0)

    # One EUP sigmoid pass covers both tanh (rows 0:3 via tanh(z)=2*sig(2z)-1)
    # and 2*sigmoid (rows 3:6).
    sig = jax.nn.sigmoid(jnp.where(row < 3, heads * 2.0, heads))
    center_size = jnp.where(row < 3, 2.0 * sig - 1.0, 2.0 * sig)

    # Quaternion normalization over rows 6..9, same formulation as the module:
    # q / (1e-12 + sqrt(sum(q^2))).
    quat_sq = jnp.where(row >= 6, heads * heads, 0.0)
    inv_norm = 1.0 / (1e-12 + jnp.sqrt(jnp.sum(quat_sq, axis=0, keepdims=True)))
    quat_v = heads * inv_norm

    out_ref[...] = jnp.where(row < 6, center_size, quat_v).astype(out_ref.dtype)


def _round_up(v, m):
    return ((v + m - 1) // m) * m


def box_decoder(x, w_mlp, b_mlp, w_center, b_center, w_size, b_size,
                w_quat, b_quat, *, block_b=4096):
    """Fused BoxDecoder forward.  x: [B, F] f32.  Returns [B, 10] f32 =
    concat([tanh(center), 2*sigmoid(size), normalize(quat + [1,0,0,0])])."""
    B, F = x.shape
    H = w_mlp.shape[1]
    assert w_mlp.shape == (F, H) and b_mlp.shape == (H,)
    assert w_center.shape == (H, 3) and b_center.shape == (3,)
    assert w_size.shape == (H, 3) and b_size.shape == (3,)
    assert w_quat.shape == (H, 4) and b_quat.shape == (4,)

    # Tile size: multiple of 128 (lane-dense [10, TB] stores), big enough to
    # amortize per-grid-step overhead, capped at ~B/2 so the grid has >= 2
    # "parallel" steps for the v7x megacore whenever the batch allows it.
    block_b = max(128, (block_b // 128) * 128)
    TB = min(block_b, max(128, _round_up((B + 1) // 2, 128)))
    n_blocks = pl.cdiv(B, TB)

    # Tiny weight prep (O(H*F) elements): fuse the three heads into one matmul
    # and fold the constant quat bias [1,0,0,0] (from forward()) into the bias.
    # Jit with the caller / hoist so this happens once per parameter set.
    quat_bias = jnp.array([1.0, 0.0, 0.0, 0.0], jnp.float32)
    w_heads = jnp.concatenate([w_center, w_size, w_quat], axis=1)       # [H, 10]
    b_heads = jnp.concatenate([b_center, b_size, b_quat + quat_bias])   # [10]

    w_mlp_t = w_mlp.T.astype(jnp.bfloat16)                   # [H, F]
    w_heads_t = w_heads.T.astype(jnp.bfloat16)               # [10, H]
    b_mlp_c = b_mlp.reshape(H, 1).astype(jnp.float32)        # [H, 1]
    b_heads_c = b_heads.reshape(10, 1).astype(jnp.float32)   # [10, 1]

    out_t = pl.pallas_call(
        box_decoder_kernel,
        out_shape=jax.ShapeDtypeStruct((10, B), jnp.float32),
        grid=(n_blocks,),
        in_specs=[
            pl.BlockSpec((TB, F), lambda i: (i, 0)),    # x tile (f32), pipelined
            pl.BlockSpec((H, F), lambda i: (0, 0)),     # weights pinned in VMEM
            pl.BlockSpec((H, 1), lambda i: (0, 0)),
            pl.BlockSpec((10, H), lambda i: (0, 0)),
            pl.BlockSpec((10, 1), lambda i: (0, 0)),
        ],
        out_specs=pl.BlockSpec((10, TB), lambda i: (0, i)),  # lane-dense store
        compiler_params=pltpu.CompilerParams(
            dimension_semantics=("parallel",),   # batch tiles shard across TCs
        ),
    )(x, w_mlp_t, b_mlp_c, w_heads_t, b_heads_c)

    # Kernel emits the lane-dense [10, B] layout; transposing this tiny array
    # restores the module's [B, 10] convention (skip if the consumer can take
    # [10, B] directly).
    return out_t.T


def _linear_init(key, fan_in, fan_out):
    # deterministic init mimicking nn.Linear's default U(-1/sqrt(fan_in), 1/sqrt(fan_in))
    k_w, k_b = jax.random.split(key)
    bound = 1.0 / np.sqrt(fan_in)
    w = jax.random.uniform(k_w, (fan_in, fan_out), jnp.float32, -bound, bound)
    b = jax.random.uniform(k_b, (fan_out,), jnp.float32, -bound, bound)
    return w, b


def _reference(x, w_mlp, b_mlp, w_center, b_center, w_size, b_size, w_quat, b_quat):
    # Pure-JAX mirror of BoxDecoder.forward with the same bf16-on-MXU precision
    # choice as the kernel (f32 accumulate), so the tolerance check validates
    # the kernel structure rather than the intentional bf16 cast.
    bf = lambda a: a.astype(jnp.bfloat16)
    feat = jax.nn.relu(jnp.dot(bf(x), bf(w_mlp),
                               preferred_element_type=jnp.float32) + b_mlp)
    feat_bf = bf(feat)
    center = jnp.tanh(jnp.dot(feat_bf, bf(w_center),
                              preferred_element_type=jnp.float32) + b_center)
    size = jax.nn.sigmoid(jnp.dot(feat_bf, bf(w_size),
                                  preferred_element_type=jnp.float32) + b_size) * 2.0
    quat = jnp.dot(feat_bf, bf(w_quat),
                   preferred_element_type=jnp.float32) + b_quat
    quat = quat + jnp.array([[1.0, 0.0, 0.0, 0.0]], jnp.float32)
    quat = quat / (1e-12 + jnp.sqrt(jnp.sum(quat ** 2, axis=1, keepdims=True)))
    return jnp.concatenate([center, size, quat], axis=1)


if __name__ == "__main__":
    # Small shapes; batch=200 exercises 2 grid steps and a ragged last tile.
    feature_size, hidden_size, batch = 32, 32, 200

    key = jax.random.PRNGKey(0)
    kx, k1, k2, k3, k4 = jax.random.split(key, 5)

    x = jax.random.normal(kx, (batch, feature_size), jnp.float32)
    w_mlp, b_mlp = _linear_init(k1, feature_size, hidden_size)
    w_c, b_c = _linear_init(k2, hidden_size, 3)
    w_s, b_s = _linear_init(k3, hidden_size, 3)
    w_q, b_q = _linear_init(k4, hidden_size, 4)

    fwd = jax.jit(box_decoder)
    out = jax.block_until_ready(fwd(x, w_mlp, b_mlp, w_c, b_c, w_s, b_s, w_q, b_q))

    ref = _reference(x, w_mlp, b_mlp, w_c, b_c, w_s, b_s, w_q, b_q)
    np.testing.assert_allclose(np.asarray(out), np.asarray(ref), rtol=2e-3, atol=2e-3)

    print("KERNEL_OK")
</pallas_src>

<mosaic_0001>
module attributes {stable_mosaic.version = 11 : i64} {
  func.func @box_decoder_kernel(%arg0: i32, %arg1: memref<128x32xf32, #tpu.memory_space<vmem>>, %arg2: memref<32x32xbf16, #tpu.memory_space<vmem>>, %arg3: memref<32x1xf32, #tpu.memory_space<vmem>>, %arg4: memref<10x32xbf16, #tpu.memory_space<vmem>>, %arg5: memref<10x1xf32, #tpu.memory_space<vmem>>, %arg6: memref<10x128xf32, #tpu.memory_space<vmem>>) attributes {dimension_semantics = [#tpu.dimension_semantics<parallel>], iteration_bounds = array<i64: 2>, scalar_prefetch = 0 : i64, scratch_operands = 0 : i64, tpu.core_type = #tpu.core_type<tc>, window_params = [{transform_indices = @transform_0, window_bounds = array<i64: 128, 32>}, {pipeline_mode = #tpu.pipeline_mode<synchronous>, transform_indices = @transform_1, window_bounds = array<i64: 32, 32>}, {pipeline_mode = #tpu.pipeline_mode<synchronous>, transform_indices = @transform_2, window_bounds = array<i64: 32, 1>}, {pipeline_mode = #tpu.pipeline_mode<synchronous>, transform_indices = @transform_3, window_bounds = array<i64: 10, 32>}, {pipeline_mode = #tpu.pipeline_mode<synchronous>, transform_indices = @transform_4, window_bounds = array<i64: 10, 1>}, {transform_indices = @transform_5, window_bounds = array<i64: 10, 128>}]} {
    %c0 = arith.constant 0 : index
    %c0_0 = arith.constant 0 : index
    %0 = vector.load %arg1[%c0, %c0_0] : memref<128x32xf32, #tpu.memory_space<vmem>>, vector<128x32xf32>
    %1 = arith.truncf %0 : vector<128x32xf32> to vector<128x32xbf16>
    %c0_1 = arith.constant 0 : index
    %c0_2 = arith.constant 0 : index
    %2 = vector.load %arg2[%c0_1, %c0_2] : memref<32x32xbf16, #tpu.memory_space<vmem>>, vector<32x32xbf16>
    %cst = arith.constant dense<0.000000e+00> : vector<32x128xf32>
    %3 = tpu.matmul %2, %1, %cst {dimension_numbers = #tpu.dot_dimension_numbers<[1], [1], [0], [0], [0, 0, 1, 0], [], []>} : vector<32x32xbf16>, vector<128x32xbf16>, vector<32x128xf32> -> vector<32x128xf32>
    %c0_3 = arith.constant 0 : index
    %c0_4 = arith.constant 0 : index
    %4 = vector.load %arg3[%c0_3, %c0_4] : memref<32x1xf32, #tpu.memory_space<vmem>>, vector<32x1xf32>
    %5 = vector.broadcast %4 : vector<32x1xf32> to vector<32x128xf32>
    %6 = arith.addf %3, %5 : vector<32x128xf32>
    %cst_5 = arith.constant 0.000000e+00 : f32
    %7 = vector.broadcast %cst_5 : f32 to vector<32x128xf32>
    %8 = arith.maximumf %6, %7 : vector<32x128xf32>
    %c0_6 = arith.constant 0 : index
    %c0_7 = arith.constant 0 : index
    %9 = vector.load %arg4[%c0_6, %c0_7] : memref<10x32xbf16, #tpu.memory_space<vmem>>, vector<10x32xbf16>
    %10 = arith.truncf %8 : vector<32x128xf32> to vector<32x128xbf16>
    %cst_8 = arith.constant dense<0.000000e+00> : vector<10x128xf32>
    %11 = tpu.matmul %9, %10, %cst_8 {dimension_numbers = #tpu.dot_dimension_numbers<[1], [0], [0], [1], [0, 0, 1, 1], [], []>} : vector<10x32xbf16>, vector<32x128xbf16>, vector<10x128xf32> -> vector<10x128xf32>
    %c0_9 = arith.constant 0 : index
    %c0_10 = arith.constant 0 : index
    %12 = vector.load %arg5[%c0_9, %c0_10] : memref<10x1xf32, #tpu.memory_space<vmem>>, vector<10x1xf32>
    %13 = vector.broadcast %12 : vector<10x1xf32> to vector<10x128xf32>
    %14 = arith.addf %11, %13 : vector<10x128xf32>
    %15 = tpu.iota {dimensions = array<i32: 0>} : vector<10x128xi32>
    %c3_i32 = arith.constant 3 : i32
    %16 = vector.broadcast %c3_i32 : i32 to vector<10x128xi32>
    %17 = arith.cmpi slt, %15, %16 : vector<10x128xi32>
    %cst_11 = arith.constant 2.000000e+00 : f32
    %18 = vector.broadcast %cst_11 : f32 to vector<10x128xf32>
    %19 = arith.mulf %14, %18 : vector<10x128xf32>
    %20 = arith.select %17, %19, %14 : vector<10x128xi1>, vector<10x128xf32>
    %21 = arith.negf %20 : vector<10x128xf32>
    %22 = math.exp %21 : vector<10x128xf32>
    %cst_12 = arith.constant 1.000000e+00 : f32
    %23 = vector.broadcast %cst_12 : f32 to vector<10x128xf32>
    %24 = arith.addf %23, %22 : vector<10x128xf32>
    %25 = arith.divf %23, %24 : vector<10x128xf32>
    %c3_i32_13 = arith.constant 3 : i32
    %26 = vector.broadcast %c3_i32_13 : i32 to vector<10x128xi32>
    %27 = arith.cmpi slt, %15, %26 : vector<10x128xi32>
    %cst_14 = arith.constant 2.000000e+00 : f32
    %28 = vector.broadcast %cst_14 : f32 to vector<10x128xf32>
    %29 = arith.mulf %28, %25 : vector<10x128xf32>
    %cst_15 = arith.constant 1.000000e+00 : f32
    %30 = vector.broadcast %cst_15 : f32 to vector<10x128xf32>
    %31 = arith.subf %29, %30 : vector<10x128xf32>
    %cst_16 = arith.constant 2.000000e+00 : f32
    %32 = vector.broadcast %cst_16 : f32 to vector<10x128xf32>
    %33 = arith.mulf %32, %25 : vector<10x128xf32>
    %34 = arith.select %27, %31, %33 : vector<10x128xi1>, vector<10x128xf32>
    %c6_i32 = arith.constant 6 : i32
    %35 = vector.broadcast %c6_i32 : i32 to vector<10x128xi32>
    %36 = arith.cmpi sge, %15, %35 : vector<10x128xi32>
    %37 = arith.mulf %14, %14 : vector<10x128xf32>
    %cst_17 = arith.constant 0.000000e+00 : f32
    %38 = vector.broadcast %cst_17 : f32 to vector<10x128xf32>
    %39 = arith.select %36, %37, %38 : vector<10x128xi1>, vector<10x128xf32>
    %cst_18 = arith.constant dense<0.000000e+00> : vector<128xf32>
    %40 = vector.multi_reduction <add>, %39, %cst_18 [0] : vector<10x128xf32> to vector<128xf32>
    %41 = vector.shape_cast %40 : vector<128xf32> to vector<1x128xf32>
    %42 = math.sqrt %41 : vector<1x128xf32>
    %cst_19 = arith.constant 9.99999996E-13 : f32
    %43 = vector.broadcast %cst_19 : f32 to vector<1x128xf32>
    %44 = arith.addf %43, %42 : vector<1x128xf32>
    %cst_20 = arith.constant 1.000000e+00 : f32
    %45 = vector.broadcast %cst_20 : f32 to vector<1x128xf32>
    %46 = arith.divf %45, %44 : vector<1x128xf32>
    %47 = vector.broadcast %46 : vector<1x128xf32> to vector<10x128xf32>
    %48 = arith.mulf %14, %47 : vector<10x128xf32>
    %c6_i32_21 = arith.constant 6 : i32
    %49 = vector.broadcast %c6_i32_21 : i32 to vector<10x128xi32>
    %50 = arith.cmpi slt, %15, %49 : vector<10x128xi32>
    %51 = arith.select %50, %34, %48 : vector<10x128xi1>, vector<10x128xf32>
    %c0_22 = arith.constant 0 : index
    %c0_23 = arith.constant 0 : index
    %52 = vector.load %arg6[%c0_22, %c0_23] : memref<10x128xf32, #tpu.memory_space<vmem>>, vector<10x128xf32>
    tpu.vector_store %arg6[%c0_22, %c0_23], %51 {strides = array<i32>} : memref<10x128xf32, #tpu.memory_space<vmem>>, vector<10x128xf32>,
    return
  }
  func.func @transform_0(%arg0: i32) -> (i32, i32) {
    %c0_i32 = arith.constant 0 : i32
    %c0_i32_0 = arith.constant 0 : i32
    return %arg0, %c0_i32 : i32, i32
  }
  func.func @transform_1(%arg0: i32) -> (i32, i32) {
    %c0_i32 = arith.constant 0 : i32
    %c0_i32_0 = arith.constant 0 : i32
    %c0_i32_1 = arith.constant 0 : i32
    return %c0_i32, %c0_i32_0 : i32, i32
  }
  func.func @transform_2(%arg0: i32) -> (i32, i32) {
    %c0_i32 = arith.constant 0 : i32
    %c0_i32_0 = arith.constant 0 : i32
    %c0_i32_1 = arith.constant 0 : i32
    return %c0_i32, %c0_i32_0 : i32, i32
  }
  func.func @transform_3(%arg0: i32) -> (i32, i32) {
    %c0_i32 = arith.constant 0 : i32
    %c0_i32_0 = arith.constant 0 : i32
    %c0_i32_1 = arith.constant 0 : i32
    return %c0_i32, %c0_i32_0 : i32, i32
  }
  func.func @transform_4(%arg0: i32) -> (i32, i32) {
    %c0_i32 = arith.constant 0 : i32
    %c0_i32_0 = arith.constant 0 : i32
    %c0_i32_1 = arith.constant 0 : i32
    return %c0_i32, %c0_i32_0 : i32, i32
  }
  func.func @transform_5(%arg0: i32) -> (i32, i32) {
    %c0_i32 = arith.constant 0 : i32
    %c0_i32_0 = arith.constant 0 : i32
    return %c0_i32, %arg0 : i32, i32
  }
}

</mosaic_0001>

<bundles_post_ra>
// kernel: box_decoder.1
= control target key start
LH: loop header
LB: loop body
LE: loop exit
PB: predicated region body
PF: predicated region fallthrough
CT: control target
= control target key end

     0   :  { %10 = vsyncpa [#allocation3], 0  ;;  %s989_s0 = inlined_call_operand.vmem [shape: f32[200,32], index: 0, kind: input, shape index: {}]   ;;  %s990_s1 = inlined_call_operand.vmem [shape: bf16[32,32], index: 1, kind: input, shape index: {}]   ;;  %s991_s2 = inlined_call_operand.vmem [shape: f32[32,1], index: 2, kind: input, shape index: {}]   ;;  %s992_s3 = inlined_call_operand.vmem [shape: bf16[10,32], index: 3, kind: input, shape index: {}]   ;;  %s993_s4 = inlined_call_operand.vmem [shape: f32[10,1], index: 4, kind: input, shape index: {}]   ;;  %s994_s5 = inlined_call_operand.hbm [shape: f32[10,200], index: 5, kind: output, shape index: {}]  }
   0x1   :  { %12 = vsyncpa [#allocation3 + $0x1], 0  ;;  %s821_s18 = smov 0   ;;  %s823_s19 = smov 0  }
   0x2   :  { %s825_s20 = smov 0   ;;  %s827_s21 = smov 0  }
   0x3 LB: > { %s842_s22 = sadd.s32 4294967295, %s782_s21   ;;  %s592_s23 = sadd.s32 4294967294, %s782_s21   ;;  %s782_s21 = sphi %s827_s21, %s1000_s21   ;;  %s778_s20 = sphi %s825_s20, %s999_s20   ;;  %s774_s19 = sphi %s823_s19, %s998_s19   ;;  %s770_s18 = sphi %s821_s18, %s997_s18  }
   0x4   : > { %s846_s24 = sadd.s32 1, %s782_s21   ;;  %s135_s25 = sadd.s32 1, %s778_s20 }
   0x5   : > { %s132_s26 = ssub.s32 %s782_s21, %s846_s24  ;;  %p145_p0 = scmp.ne.s32.totalorder %s778_s20, %s774_s19 }
   0x6   : > { %p133_p1 = scmp.eq.s32.totalorder %s132_s26, 0  ;;  %p146_p2 = scmp.eq.s32.totalorder %s842_s22, 1 }
   0x7   : > { %p151_p3 = scmp.ne.s32.totalorder %s774_s19, %s770_s18  ;;  %p152_p4 = scmp.eq.s32.totalorder %s592_s23, 1 }
   0x8   : > { %s857_s27 = scalar_select %p133_p1, %s778_s20, %s135_s25  }
   0x9   : > { %p859_p5 = por %p146_p2, %p145_p0  ;;  %p863_p6 = por %p152_p4, %p151_p3 }
   0xa   : > { %p595_p7 = scmp.ge.s32.totalorder %s782_s21, 1  ;;  %p199_p8 = scmp.lt.s32.totalorder %s782_s21, 3 }
   0xc   : > { %p200_p9 = pnand %p595_p7, %p199_p8 }
   0xd   : > { %s597_s30 = sshll.u32 (!%p200_p9), %s842_s22, 4  ;;  %v709_v0 = vld [vmem:[%s990_s1] sm:$0xff] (!%p200_p9)   ;;  %vm308_vm0 = vcmask (!%p200_p9), 261120   ;;  %v276_v2 = vld [vmem:[%s991_s2 + $0x10] sm:$0xff] (!%p200_p9)  ;;  %v784_v3 = vmov (!%p200_p9), 0   ;;  %v275_v4 = vld [vmem:[%s991_s2 + $0x8] sm:$0xff] (!%p200_p9)  ;;  %v457_v61 = vlaneseq (!%p200_p9) }
   0xe   : > { %203 = sbr.rel (%p200_p9) target bundleno = 599 (0x257), region = 40  ;;  %p236_p10 = scmp.lt.s32.totalorder (!%p200_p9), %s597_s30, 24  ;;  %v274_v1 = vld [vmem:[%s991_s2] sm:$0xff] (!%p200_p9)  ;;  %642 = vmatprep.mubr.msk.bf16.mxu0 (!%p200_p9), %vm308_vm0, %v709_v0  ;;  %707 = vset.pattern.permute.xlu0 (!%p200_p9), %v784_v3  ;;  %v277_v5 = vld [vmem:[%s991_s2 + $0x18] sm:$0xff] (!%p200_p9)  ;;  %v397_v14 = vld [vmem:[%s993_s4 + $0x8] sm:$0x3] (!%p200_p9) }
   0xf   : > { %280 = vperm.xlu0 (!%p200_p9), %707, %v274_v1   ;;  %708 = vset.pattern.permute.xlu1 (!%p200_p9), %v784_v3  ;;  %v396_v12 = vld [vmem:[%s993_s4] sm:$0xff] (!%p200_p9)  ;;  %v710_v40 = vld [vmem:[%s990_s1 + $0x8] sm:$0xff] (!%p200_p9)   ;;  %v785_v41 = vmov (!%p200_p9), 0.0   ;;  %vm786_vm1 = vmmov (!%p200_p9), 0   ;;  %v458_v62 = vshrl.u32 (!%p200_p9), %v457_v61, 7  ;;  %vm490_vm4 = vcmask (!%p200_p9), 1041408  }
  0x10   : > { %290 = vperm.xlu1 (!%p200_p9), %708, %v276_v2   ;;  %646 = vmatprep.subr.bf16.mxu1 (!%p200_p9), %v785_v41  ;;  %v711_v60 = vld [vmem:[%s992_s3] sm:$0x1f] (!%p200_p9)   ;;  %s610_s16 = sshll.u32 (!%p200_p9), %s842_s22, 7 }
  0x11   : > { %650 = vmatprep.mubr.msk.bf16.mxu1 (!%p200_p9), %vm786_vm1, %v785_v41  ;;  %vm460_vm2 = vcmp.lt.s32.totalorder (!%p200_p9), %v458_v62, 3  ;;  %vm484_vm3 = vcmp.ge.s32.totalorder (!%p200_p9), %v458_v62, 6  ;;  %vm511_vm7 = vcmp.lt.s32.totalorder (!%p200_p9), %v458_v62, 6  ;;  %s945_s25 = scalar_lea.hbm (!%p200_p9), %s994_s5, %s610_s16 }
  0x13   : > { %285 = vperm.xlu0 (!%p200_p9), %707, %v275_v4  }
  0x14   : > { %295 = vperm.xlu1 (!%p200_p9), %708, %v277_v5  }
  0x15   : > { %s1002_s30 = smov (!%p236_p10, %s597_s30), 24 }
  0x16   : > { %s598_s12 = sshll.u32 %s1002_s30, 3  ;;  %s787_s30 = smov [#allocation2]  }
  0x17   : > { %s886_s17 = scalar_lea.vmem %s989_s0, %s598_s12  ;;  %400 = vperm.xlu0 %707, %v396_v12   ;;  %s228_s12 = sand.u32 1, %s774_s19  }
  0x18   : > { %v246_v6 = vld [vmem:[%s886_s17] sm:$0xff]  ;;  %v247_v7 = vld [vmem:[%s886_s17 + $0x8] sm:$0xff]  ;;  %v248_v8 = vld [vmem:[%s886_s17 + $0x10] sm:$0xff]  ;;  %405 = vperm.xlu1 %708, %v397_v14   ;;  %s596_s13 = sshll.u32 %s228_s12, 4  ;;  %s948_s22 = scalar_lea.sflag [#allocation3], %s228_s12 }
  0x19   : > { %v262_v9 = vpack.c.bf16 %v247_v7, %v246_v6  ;;  %v249_v10 = vld [vmem:[%s886_s17 + $0x18] sm:$0xff]  ;;  %v250_v15 = vld [vmem:[%s886_s17 + $0x20] sm:$0xff]  ;;  %v251_v16 = vld [vmem:[%s886_s17 + $0x28] sm:$0xff]  ;;  %s230_s14 = scalar_lea.vmem [#allocation2], %s596_s13  ;;  %s724_s6 = sshll.u32 %s787_s30, 4  ;;  %s725_s6 = int_to_ptr.vmem [resolvable:$false] %s724_s6 }
  0x1a   : > { %v263_v11 = vpack.c.bf16 %v249_v10, %v248_v8  ;;  %v264_v18 = vpack.c.bf16 %v251_v16, %v250_v15  ;;  %v252_v19 = vld [vmem:[%s886_s17 + $0x30] sm:$0xff]  ;;  %v253_v20 = vld [vmem:[%s886_s17 + $0x38] sm:$0xff]  ;;  %v254_v23 = vld [vmem:[%s886_s17 + $0x40] sm:$0xff]  ;;  %s530_s15 = sshll.u32 %s230_s14, 4  ;;  %s726_s7 = scalar_lea.vmem %s725_s6, 512  ;;  %s940_s15 = int_to_ptr.vmem [resolvable:$true] %s530_s15 }
  0x1b   : > { %654 = vmatprep.subr.msk.bf16.mxu0 %vm308_vm0, %v262_v9  ;;  %v316_v13 = vsel %vm308_vm0, %v262_v9, 0  ;;  %v265_v22 = vpack.c.bf16 %v253_v20, %v252_v19  ;;  %v255_v24 = vld [vmem:[%s886_s17 + $0x48] sm:$0xff]  ;;  %v256_v27 = vld [vmem:[%s886_s17 + $0x50] sm:$0xff]  ;;  %v257_v28 = vld [vmem:[%s886_s17 + $0x58] sm:$0xff]  ;;  %s720_s26 = scalar_lea.vmem %s940_s15, 256  ;;  %p727_p0 = scmp.lt.s32.totalorder %s940_s15, %s725_s6 }
  0x1c   : > { %627 = vmatpush3.bf16.xpose.msra.mxu0 %v316_v13  ;;  %v319_v17 = vsel %vm308_vm0, %v263_v11, 0  ;;  %v322_v21 = vsel %vm308_vm0, %v264_v18, 0  ;;  %v266_v26 = vpack.c.bf16 %v255_v24, %v254_v23  ;;  %v267_v30 = vpack.c.bf16 %v257_v28, %v256_v27  ;;  %v258_v31 = vld [vmem:[%s886_s17 + $0x60] sm:$0xff]  ;;  %v259_v32 = vld [vmem:[%s886_s17 + $0x68] sm:$0xff]  ;;  %v260_v35 = vld [vmem:[%s886_s17 + $0x70] sm:$0xff]  ;;  %p721_p11 = scmp.ne.s32.totalorder %s940_s15, %s720_s26  ;;  %p728_p1 = scmp.lt.s32.totalorder %s726_s7, %s720_s26 }
  0x1d   : > { %655 = vmatprep.subr.msk.bf16.mxu0 %vm308_vm0, %v263_v11  ;;  %v325_v25 = vsel %vm308_vm0, %v265_v22, 0  ;;  %v268_v34 = vpack.c.bf16 %v259_v32, %v258_v31  ;;  %v261_v36 = vld [vmem:[%s886_s17 + $0x78] sm:$0xff] }
  0x1e   : > { %v328_v29 = vsel %vm308_vm0, %v266_v26, 0  ;;  %v331_v33 = vsel %vm308_vm0, %v267_v30, 0  ;;  %v269_v38 = vpack.c.bf16 %v261_v36, %v260_v35  ;;  %p722_p12 = pnand %p721_p11, %p859_p5  ;;  %p729_p2 = por %p728_p1, %p727_p0 }
  0x1f   : > { %v334_v37 = vsel %vm308_vm0, %v268_v34, 0 }
  0x20   : > { %v337_v39 = vsel %vm308_vm0, %v269_v38, 0  ;;  %p723_p13 = pneg %p722_p12 }
  0x22   : > { %p730_p3 = pnand %p729_p2, %p723_p13 }
  0x24   : > { %629 = vmatpush3.bf16.xpose.msra.mxu0 %v319_v17 }
  0x25   : > { %656 = vmatprep.subr.msk.bf16.mxu0 %vm308_vm0, %v264_v18 }
  0x2c   : > { %631 = vmatpush3.bf16.xpose.msra.mxu0 %v322_v21 }
  0x2d   : > { %657 = vmatprep.subr.msk.bf16.mxu0 %vm308_vm0, %v265_v22 }
  0x34   : > { %633 = vmatpush3.bf16.xpose.msra.mxu0 %v325_v25 }
  0x35   : > { %658 = vmatprep.subr.msk.bf16.mxu0 %vm308_vm0, %v266_v26 }
  0x3c   : > { %635 = vmatpush3.bf16.xpose.msra.mxu0 %v328_v29 }
  0x3d   : > { %659 = vmatprep.subr.msk.bf16.mxu0 %vm308_vm0, %v267_v30 }
  0x44   : > { %637 = vmatpush3.bf16.xpose.msra.mxu0 %v331_v33 }
  0x45   : > { %660 = vmatprep.subr.msk.bf16.mxu0 %vm308_vm0, %v268_v34 }
  0x4c   : > { %639 = vmatpush3.bf16.xpose.msra.mxu0 %v334_v37 }
  0x4d   : > { %661 = vmatprep.subr.msk.bf16.mxu0 %vm308_vm0, %v269_v38 }
  0x54   : > { %641 = vmatpush3.bf16.xpose.msra.mxu0 %v337_v39 }
  0x5b   : > { %643 = vmatmul.mubr.msk.bf16.vlgmr.msra.gmra.mrb[0].mxu0 %vm308_vm0, %v710_v40 }
  0x8e   : > { %v281_v43 = vpop.permute.xlu0 %280 }
  0x8f   : > { %v291_v42 = vpop.permute.xlu1 %290 }
  0x92   : > { %v286_v50 = vpop.permute.xlu0 %285 }
  0x93   : > { %v296_v47 = vpop.permute.xlu1 %295 }
  0x96   : > { %v401_v63 = vpop.permute.xlu0 %400 }
  0x97   : > { %v406_v3 = vpop.permute.xlu1 %405 }
 0x12e   : > { %v644_v44 = vpop.f32.mrb[0].mxu0 }
 0x12f   : > { %v382_v45 = vadd.f32 %v644_v44, %v291_v42  ;;  %v373_v46 = vpop.f32.mrb[1].mxu0 }
 0x130   : > { %v374_v48 = vadd.f32 %v373_v46, %v281_v43  ;;  %v645_v49 = vpop.f32.mrb[2].mxu0 }
 0x131   : > { %v385_v51 = vadd.f32 %v645_v49, %v296_v47  ;;  %v376_v52 = vpop.f32.mrb[3].mxu0  ;;  %v390_v54 = vmax.f32 %v382_v45, 0.0 }
 0x132   : > { %v377_v53 = vadd.f32 %v376_v52, %v286_v50  ;;  %v388_v56 = vmax.f32 %v374_v48, 0.0 }
 0x133   : > { %v391_v55 = vmax.f32 %v385_v51, 0.0 }
 0x134   : > { %v389_v57 = vmax.f32 %v377_v53, 0.0 }
 0x135   : > { %v395_v58 = vpack.c.bf16 %v391_v55, %v390_v54 }
 0x136   : > { %v394_v59 = vpack.c.bf16 %v389_v57, %v388_v56 }
 0x138   : > { %647 = vmatpush3.bf16.msra.mxu1 %v394_v59 }
 0x139   : > { %648 = vmatprep.subr.bf16.mxu1 %v785_v41 }
 0x13c   : > { %649 = vmatpush3.bf16.msra.mxu1 %v395_v58 }
 0x13f   : > { %651 = vmatmul.mubr.msk.bf16.vlgmr.msra.gmra.mrb[0].mxu1 %vm308_vm0, %v711_v60 }
 0x212   : > { %v450_v0 = vpop.f32.mrb[0].mxu1 }
 0x213   : > { %v451_v1 = vadd.f32 %v450_v0, %v401_v63  ;;  %v652_v2 = vpop.f32.mrb[1].mxu1 }
 0x214   : > { %v453_v4 = vpop.f32.mrb[2].mxu1 }
 0x215   : > { %v462_v5 = vmul.f32 2.0, %v451_v1  ;;  %v454_v6 = vadd.f32 %v453_v4, %v406_v3  ;;  %v486_v7 = vmul.f32 %v451_v1, %v451_v1  ;;  %v653_v8 = vpop.f32.mrb[3].mxu1 }
 0x217   : > { %v487_v9 = vmul.f32 %v454_v6, %v454_v6  ;;  %v464_v10 = vsel %vm460_vm2, %v462_v5, %v451_v1  ;;  %v488_v11 = vsel %vm484_vm3, %v486_v7, 0.0 }
 0x218   : > { %v605_v14 = vmul.f32 -1.442695, %v464_v10 }
 0x219   : > { %v491_v12 = vsel %vm490_vm4, %v487_v9, 0.0 }
 0x21a   : > { %v492_v13 = vadd.f32 %v491_v12, %v488_v11  ;;  %712 = vpow2.f32 %v605_v14 }
 0x21c   : > { %v493_v15 = vrot.slane %v492_v13, 4 }
 0x21e   : > { %v494_v16 = vadd.f32 %v493_v15, %v492_v13 }
 0x220   : > { %v495_v17 = vrot.slane %v494_v16, 2 }
 0x222   : > { %v496_v18 = vadd.f32 %v495_v17, %v494_v16 }
 0x224   : > { %v497_v19 = vrot.slane %v496_v18, 1  ;;  %v713_v21 = vpop.eup %712 }
 0x225   : > { %v472_v22 = vadd.f32 1.0, %v713_v21 }
 0x226   : > { %v498_v20 = vadd.f32 %v497_v19, %v496_v18 }
 0x228   : > { %714 = vrsqrt.f32 %v498_v20  ;;  %vm501_vm5 = vcmp.eq.f32.partialorder %v498_v20, inf  ;;  %v504_v25 = vand.u32 2147483648, %v498_v20  ;;  %vm503_vm6 = vcmp.eq.f32.partialorder %v498_v20, 0.0 }
 0x229   : > { %716 = vrcp.f32 %v472_v22 }
 0x232   : > { %v715_v23 = vpop.eup %714 }
 0x233   : > { %v500_v24 = vmul.f32 %v715_v23, %v498_v20  ;;  %v717_v29 = vpop.eup %716 }
 0x234   : > { %v478_v30 = vmul.f32 2.0, %v717_v29 }
 0x235   : > { %v502_v26 = vsel %vm501_vm5, %v498_v20, %v500_v24 }
 0x236   : > { %v505_v27 = vsel %vm503_vm6, %v504_v25, %v502_v26  ;;  %v607_v31 = vadd.f32 -1.0, %v478_v30 }
 0x237   : > { %v506_v28 = vadd.f32 1e-12, %v505_v27 }
 0x238   : > { %v482_v35 = vsel %vm460_vm2, %v607_v31, %v478_v30 }
 0x239   : > { %718 = vrcp.f32 %v506_v28 }
 0x243   : > { %v719_v32 = vpop.eup %718 }
 0x244   : > { %v509_v33 = vmul.f32 %v719_v32, %v451_v1  ;;  %v510_v34 = vmul.f32 %v719_v32, %v454_v6 }
 0x246   : > { %v513_v36 = vsel %vm511_vm7, %v482_v35, %v509_v33  ;;  %516 = vst [vmem:[%s230_s14 + $0x8] sm:$0x3] %v510_v34 }
 0x247   : > { %515 = vst [vmem:[%s230_s14] sm:$0xff] %v513_v36 }
 0x248   : > { %733 = shalt.err (!%p730_p3)
}
 0x249   : > { %s734_s8 = scalar_lea.hbm %s945_s25, 256  ;;  %s738_s11 = scalar_lea.hbm %s994_s5, 512 }
 0x24a   : > { %p735_p4 = scmp.ne.s32.totalorder %s945_s25, %s734_s8  ;;  %p739_p9 = scmp.lt.u32.totalorder %s945_s25, %s994_s5 }
 0x24b   : > { %p740_p10 = scmp.lt.u32.totalorder %s738_s11, %s734_s8  ;;  %p742_p12 = scmp.lt.u32.totalorder %s734_s8, %s945_s25 }
 0x24c   : > { %p736_p7 = pnand %p735_p4, %p859_p5 }
 0x24d   : > { %p741_p11 = por %p740_p10, %p739_p9 }
 0x24e   : > { %p737_p8 = pneg %p736_p7 }
 0x24f   : > { %p743_p13 = por %p742_p12, %p741_p11 }
 0x251   : > { %p744_p0 = pnand %p743_p13, %p737_p8 }
 0x253   : > { %747 = shalt.err (!%p744_p0)
}
 0x254   : > { %s788_s14 = smov 128   ;;  %s789_s16 = smov 256  }
 0x255   : > { %s790_s17 = smov 8  }
 0x256   : > { %662 = dma.vmem_to_hbm [thread:$0]  (%p859_p5), %s940_s15, 256, %s945_s25, %s948_s22, %s788_s14, %s789_s16, %s790_s17  }
 0x257 PF: > { %p668_p1 = scmp.ge.s32.totalorder %s782_s21, 2  ;;  %s545_s23 = sand.u32 1, %s770_s18  }
 0x258   : > { %s546_s26 = scalar_lea.sflag [#allocation3], %s545_s23 }
 0x259   : > { %p665_p2 = pnand %p668_p1, %p863_p6 }
 0x25b   : > { %765 = dma.done.wait (!%p665_p2), %s546_s26, 256  }
 0x25c   : > { %767 = vsyncadd (!%p665_p2), %s546_s26, 4294967040  ;;  %p15_p3 = scmp.ge.s32.totalorder %s846_s24, 4   ;;  %s997_s18 = smov %s774_s19 }
 0x25d   : > { %s998_s19 = smov %s778_s20  ;;  %s999_s20 = smov %s857_s27 }
 0x25e   : > { %s1000_s21 = smov %s846_s24  ;;  %17 = sbr.rel (!%p15_p3) target bundleno = 3 (0x3), region = 75 }
 0x265   :  { %551 = vsyncpa [#allocation3], 1 }
 0x266   :  { %553 = vsyncpa [#allocation3 + $0x1], 1 }

</bundles_post_ra>
